<compile_context>
chip_gen: v5e
topology: v5e:2x2
jax: 0.10.0
libtpu: 0.0.40
codegen_flags: <defaults>
</compile_context>

<pallas_src>
import jax
import jax.numpy as jnp
from jax.experimental import pallas as pl
from jax.experimental.pallas import tpu as pltpu


def gru_recurrence_kernel(gx_ref,     # (T, Bb, 3H) time-major x-side gates (f32)
                          whzr_ref,   # (H, 2H)     fused [Wuh | Wrh]
                          wch_ref,    # (H, H)      candidate recurrent weights
                          h_out_ref,  # (Bb, H)     final hidden state (f32)
                          h_sc):      # (Bb, H)     VMEM scratch carrying h
    c = pl.program_id(1)              # time-chunk index (sequential axis)
    T = gx_ref.shape[0]
    H = wch_ref.shape[0]
    cdt = whzr_ref.dtype              # MXU operand dtype (f32 or bf16)

    @pl.when(c == 0)
    def _():
        h_sc[...] = jnp.zeros_like(h_sc)

    whzr = whzr_ref[...]
    wch = wch_ref[...]

    h = h_sc[...]                     # (Bb, H) f32
    # Fully unrolled over the static chunk length; only the h-dependent
    # matmuls remain in the serial chain.
    for i in range(T):
        g = gx_ref[i]                 # (Bb, 3H) contiguous tile: [z | r | cand]
        zr = jax.nn.sigmoid(
            g[:, :2 * H]
            + jnp.dot(h.astype(cdt), whzr, preferred_element_type=jnp.float32))
        z = zr[:, :H]
        r = zr[:, H:]
        cand = jnp.tanh(
            g[:, 2 * H:]
            + jnp.dot((r * h).astype(cdt), wch,
                      preferred_element_type=jnp.float32))
        h = (1.0 - z) * h + z * cand

    h_sc[...] = h
    h_out_ref[...] = h.astype(h_out_ref.dtype)


def gru_forward(inputs, params, *, time_chunk=8, batch_block=None,
                weight_dtype=jnp.float32):
    """inputs: (batch, seq, input_size) -> final hidden state (batch, hidden)."""
    B, S, D = inputs.shape
    H = params["wuh"].shape[0]

    # Legal tile sizes: T only has to divide S (it is a leading block dim);
    # Bb must be a multiple of 8 (sublane constraint) or the full batch.
    T = time_chunk if (time_chunk is not None and S % time_chunk == 0) else S
    Bb = B
    if (batch_block is not None and B % batch_block == 0
            and (batch_block % 8 == 0 or batch_block == B)):
        Bb = batch_block

    # ---- hoisted x-side projections: one big matmul outside the recurrence --
    wx3 = jnp.concatenate([params["wux"], params["wrx"], params["wcx"]], axis=1)
    bx3 = jnp.concatenate([params["bu"], params["br"], params["bc"]], axis=1)
    gates_x = (
        jnp.dot(inputs.reshape(B * S, D).astype(weight_dtype),
                wx3.astype(weight_dtype),
                preferred_element_type=jnp.float32)
        + bx3
    ).reshape(B, S, 3 * H).transpose(1, 0, 2)          # (S, B, 3H) time-major, f32

    # ---- fused recurrent weights (lane-dense 2H output) ---------------------
    whzr = jnp.concatenate([params["wuh"], params["wrh"]], axis=1).astype(weight_dtype)
    wch = params["wch"].astype(weight_dtype)

    grid = (B // Bb, S // T)
    grid_spec = pltpu.PrefetchScalarGridSpec(
        num_scalar_prefetch=0,
        grid=grid,
        in_specs=[
            pl.BlockSpec((T, Bb, 3 * H), lambda b, c: (c, b, 0)),  # gates_x chunk
            pl.BlockSpec((H, 2 * H), lambda b, c: (0, 0)),         # [Wuh|Wrh]
            pl.BlockSpec((H, H), lambda b, c: (0, 0)),             # Wch
        ],
        out_specs=pl.BlockSpec((Bb, H), lambda b, c: (b, 0)),
        scratch_shapes=[pltpu.VMEM((Bb, H), jnp.float32)],
    )

    return pl.pallas_call(
        gru_recurrence_kernel,
        out_shape=jax.ShapeDtypeStruct((B, H), jnp.float32),
        grid_spec=grid_spec,
        compiler_params=pltpu.CompilerParams(
            # Batch blocks are independent -> 'parallel' (v7x megacore);
            # the recurrence over time must stay 'arbitrary' (sequential).
            dimension_semantics=("parallel", "arbitrary")),
    )(gates_x, whzr, wch)


def init_params(key, input_size, hidden_size):
    """Mirror nn.Linear(input_size + hidden_size, hidden_size) x3, bias = 0."""
    fan_in = input_size + hidden_size
    bound = 1.0 / jnp.sqrt(jnp.float32(fan_in))
    ku, kr, kc = jax.random.split(key, 3)

    def one_gate(k):
        w = jax.random.uniform(k, (hidden_size, fan_in), jnp.float32,
                               minval=-bound, maxval=bound)
        wx = w[:, :input_size].T          # (D, H)
        wh = w[:, input_size:].T          # (H, H)
        b = jnp.zeros((1, hidden_size), jnp.float32)  # .bias.data.fill_(0)
        return wx, wh, b

    wux, wuh, bu = one_gate(ku)
    wrx, wrh, br = one_gate(kr)
    wcx, wch, bc = one_gate(kc)
    return dict(wux=wux, wuh=wuh, bu=bu,
                wrx=wrx, wrh=wrh, br=br,
                wcx=wcx, wch=wch, bc=bc)


def gru_reference(inputs, params):
    """Pure-JAX replica of the PyTorch forward for verification (f32)."""
    B, S, _ = inputs.shape
    H = params["wuh"].shape[0]
    h = jnp.zeros((B, H), jnp.float32)
    for t in range(S):
        x = inputs[:, t, :]
        z = jax.nn.sigmoid(x @ params["wux"] + h @ params["wuh"] + params["bu"])
        r = jax.nn.sigmoid(x @ params["wrx"] + h @ params["wrh"] + params["br"])
        c = jnp.tanh(x @ params["wcx"] + (r * h) @ params["wch"] + params["bc"])
        h = (1.0 - z) * h + z * c
    return h


if __name__ == "__main__":
    batch, seq, input_size, hidden_size = 16, 16, 16, 32

    key = jax.random.PRNGKey(0)
    k_x, k_p = jax.random.split(key)
    inputs = jax.random.normal(k_x, (batch, seq, input_size), jnp.float32)
    params = init_params(k_p, input_size, hidden_size)

    ref = gru_reference(inputs, params)

    # f32 path: grid = (2 batch blocks, 2 time chunks).
    out = gru_forward(inputs, params, time_chunk=8, batch_block=8)
    out = jax.block_until_ready(out)
    assert out.shape == (batch, hidden_size)
    assert jnp.allclose(out, ref, atol=2e-4, rtol=2e-4), "f32 mismatch vs reference"

    # bf16 matmul operands (f32 accumulation / gate math) — v6e/v7x MXU path.
    out_bf16 = gru_forward(inputs, params, time_chunk=8, batch_block=8,
                           weight_dtype=jnp.bfloat16)
    out_bf16 = jax.block_until_ready(out_bf16)
    assert jnp.allclose(out_bf16, ref, atol=5e-2, rtol=5e-2), "bf16 mismatch vs reference"

    print("KERNEL_OK")
</pallas_src>

<mosaic_0001>
module attributes {stable_mosaic.version = 11 : i64} {
  func.func @gru_recurrence_kernel(%arg0: i32, %arg1: i32, %arg2: memref<8x8x96xf32, #tpu.memory_space<vmem>>, %arg3: memref<32x64xf32, #tpu.memory_space<vmem>>, %arg4: memref<32x32xf32, #tpu.memory_space<vmem>>, %arg5: memref<8x32xf32, #tpu.memory_space<vmem>>, %arg6: memref<8x32xf32, #tpu.memory_space<vmem>>) attributes {dimension_semantics = [#tpu.dimension_semantics<parallel>, #tpu.dimension_semantics<arbitrary>], iteration_bounds = array<i64: 2, 2>, scalar_prefetch = 0 : i64, scratch_operands = 1 : i64, tpu.core_type = #tpu.core_type<tc>, window_params = [{transform_indices = @transform_0, window_bounds = array<i64: 8, 8, 96>}, {pipeline_mode = #tpu.pipeline_mode<synchronous>, transform_indices = @transform_1, window_bounds = array<i64: 32, 64>}, {pipeline_mode = #tpu.pipeline_mode<synchronous>, transform_indices = @transform_2, window_bounds = array<i64: 32, 32>}, {transform_indices = @transform_3, window_bounds = array<i64: 8, 32>}]} {
    %c0_i32 = arith.constant 0 : i32
    %0 = arith.cmpi eq, %arg1, %c0_i32 : i32
    %1 = arith.extui %0 : i1 to i32
    %c0_i32_0 = arith.constant 0 : i32
    %2 = arith.cmpi ne, %1, %c0_i32_0 : i32
    scf.if %2 {
      %cst_58 = arith.constant 0.000000e+00 : f32
      %184 = vector.broadcast %cst_58 : f32 to vector<8x32xf32>
      %c0_59 = arith.constant 0 : index
      %c0_60 = arith.constant 0 : index
      %185 = vector.load %arg6[%c0_59, %c0_60] : memref<8x32xf32, #tpu.memory_space<vmem>>, vector<8x32xf32>
      tpu.vector_store %arg6[%c0_59, %c0_60], %184 {strides = array<i32>} : memref<8x32xf32, #tpu.memory_space<vmem>>, vector<8x32xf32>,
    } else {
    }
    %c0 = arith.constant 0 : index
    %c0_1 = arith.constant 0 : index
    %3 = vector.load %arg3[%c0, %c0_1] : memref<32x64xf32, #tpu.memory_space<vmem>>, vector<32x64xf32>
    %c0_2 = arith.constant 0 : index
    %c0_3 = arith.constant 0 : index
    %4 = vector.load %arg4[%c0_2, %c0_3] : memref<32x32xf32, #tpu.memory_space<vmem>>, vector<32x32xf32>
    %c0_4 = arith.constant 0 : index
    %c0_5 = arith.constant 0 : index
    %5 = vector.load %arg6[%c0_4, %c0_5] : memref<8x32xf32, #tpu.memory_space<vmem>>, vector<8x32xf32>
    %c0_6 = arith.constant 0 : index
    %c0_7 = arith.constant 0 : index
    %c0_8 = arith.constant 0 : index
    %6 = vector.load %arg2[%c0_6, %c0_7, %c0_8] : memref<8x8x96xf32, #tpu.memory_space<vmem>>, vector<1x8x96xf32>
    %7 = vector.shape_cast %6 : vector<1x8x96xf32> to vector<8x96xf32>
    %8 = vector.extract_strided_slice %7 {offsets = [0, 0], sizes = [8, 64], strides = [1, 1]} : vector<8x96xf32> to vector<8x64xf32>
    %cst = arith.constant dense<0.000000e+00> : vector<8x64xf32>
    %9 = tpu.matmul %5, %3, %cst {dimension_numbers = #tpu.dot_dimension_numbers<[1], [0], [0], [1], [0, 0, 1, 1], [], []>} : vector<8x32xf32>, vector<32x64xf32>, vector<8x64xf32> -> vector<8x64xf32>
    %10 = arith.addf %8, %9 : vector<8x64xf32>
    %11 = arith.negf %10 : vector<8x64xf32>
    %12 = math.exp %11 : vector<8x64xf32>
    %cst_9 = arith.constant 1.000000e+00 : f32
    %13 = vector.broadcast %cst_9 : f32 to vector<8x64xf32>
    %14 = arith.addf %13, %12 : vector<8x64xf32>
    %15 = arith.divf %13, %14 : vector<8x64xf32>
    %16 = vector.extract_strided_slice %15 {offsets = [0, 0], sizes = [8, 32], strides = [1, 1]} : vector<8x64xf32> to vector<8x32xf32>
    %17 = vector.extract_strided_slice %15 {offsets = [0, 32], sizes = [8, 32], strides = [1, 1]} : vector<8x64xf32> to vector<8x32xf32>
    %18 = vector.extract_strided_slice %7 {offsets = [0, 64], sizes = [8, 32], strides = [1, 1]} : vector<8x96xf32> to vector<8x32xf32>
    %19 = arith.mulf %17, %5 : vector<8x32xf32>
    %cst_10 = arith.constant dense<0.000000e+00> : vector<8x32xf32>
    %20 = tpu.matmul %19, %4, %cst_10 {dimension_numbers = #tpu.dot_dimension_numbers<[1], [0], [0], [1], [0, 0, 1, 1], [], []>} : vector<8x32xf32>, vector<32x32xf32>, vector<8x32xf32> -> vector<8x32xf32>
    %21 = arith.addf %18, %20 : vector<8x32xf32>
    %22 = math.tanh %21 : vector<8x32xf32>
    %cst_11 = arith.constant 1.000000e+00 : f32
    %23 = vector.broadcast %cst_11 : f32 to vector<8x32xf32>
    %24 = arith.subf %23, %16 : vector<8x32xf32>
    %25 = arith.mulf %24, %5 : vector<8x32xf32>
    %26 = arith.mulf %16, %22 : vector<8x32xf32>
    %27 = arith.addf %25, %26 : vector<8x32xf32>
    %c1 = arith.constant 1 : index
    %c0_12 = arith.constant 0 : index
    %c0_13 = arith.constant 0 : index
    %28 = vector.load %arg2[%c1, %c0_12, %c0_13] : memref<8x8x96xf32, #tpu.memory_space<vmem>>, vector<1x8x96xf32>
    %29 = vector.shape_cast %28 : vector<1x8x96xf32> to vector<8x96xf32>
    %30 = vector.extract_strided_slice %29 {offsets = [0, 0], sizes = [8, 64], strides = [1, 1]} : vector<8x96xf32> to vector<8x64xf32>
    %cst_14 = arith.constant dense<0.000000e+00> : vector<8x64xf32>
    %31 = tpu.matmul %27, %3, %cst_14 {dimension_numbers = #tpu.dot_dimension_numbers<[1], [0], [0], [1], [0, 0, 1, 1], [], []>} : vector<8x32xf32>, vector<32x64xf32>, vector<8x64xf32> -> vector<8x64xf32>
    %32 = arith.addf %30, %31 : vector<8x64xf32>
    %33 = arith.negf %32 : vector<8x64xf32>
    %34 = math.exp %33 : vector<8x64xf32>
    %cst_15 = arith.constant 1.000000e+00 : f32
    %35 = vector.broadcast %cst_15 : f32 to vector<8x64xf32>
    %36 = arith.addf %35, %34 : vector<8x64xf32>
    %37 = arith.divf %35, %36 : vector<8x64xf32>
    %38 = vector.extract_strided_slice %37 {offsets = [0, 0], sizes = [8, 32], strides = [1, 1]} : vector<8x64xf32> to vector<8x32xf32>
    %39 = vector.extract_strided_slice %37 {offsets = [0, 32], sizes = [8, 32], strides = [1, 1]} : vector<8x64xf32> to vector<8x32xf32>
    %40 = vector.extract_strided_slice %29 {offsets = [0, 64], sizes = [8, 32], strides = [1, 1]} : vector<8x96xf32> to vector<8x32xf32>
    %41 = arith.mulf %39, %27 : vector<8x32xf32>
    %cst_16 = arith.constant dense<0.000000e+00> : vector<8x32xf32>
    %42 = tpu.matmul %41, %4, %cst_16 {dimension_numbers = #tpu.dot_dimension_numbers<[1], [0], [0], [1], [0, 0, 1, 1], [], []>} : vector<8x32xf32>, vector<32x32xf32>, vector<8x32xf32> -> vector<8x32xf32>
    %43 = arith.addf %40, %42 : vector<8x32xf32>
    %44 = math.tanh %43 : vector<8x32xf32>
    %cst_17 = arith.constant 1.000000e+00 : f32
    %45 = vector.broadcast %cst_17 : f32 to vector<8x32xf32>
    %46 = arith.subf %45, %38 : vector<8x32xf32>
    %47 = arith.mulf %46, %27 : vector<8x32xf32>
    %48 = arith.mulf %38, %44 : vector<8x32xf32>
    %49 = arith.addf %47, %48 : vector<8x32xf32>
    %c2 = arith.constant 2 : index
    %c0_18 = arith.constant 0 : index
    %c0_19 = arith.constant 0 : index
    %50 = vector.load %arg2[%c2, %c0_18, %c0_19] : memref<8x8x96xf32, #tpu.memory_space<vmem>>, vector<1x8x96xf32>
    %51 = vector.shape_cast %50 : vector<1x8x96xf32> to vector<8x96xf32>
    %52 = vector.extract_strided_slice %51 {offsets = [0, 0], sizes = [8, 64], strides = [1, 1]} : vector<8x96xf32> to vector<8x64xf32>
    %cst_20 = arith.constant dense<0.000000e+00> : vector<8x64xf32>
    %53 = tpu.matmul %49, %3, %cst_20 {dimension_numbers = #tpu.dot_dimension_numbers<[1], [0], [0], [1], [0, 0, 1, 1], [], []>} : vector<8x32xf32>, vector<32x64xf32>, vector<8x64xf32> -> vector<8x64xf32>
    %54 = arith.addf %52, %53 : vector<8x64xf32>
    %55 = arith.negf %54 : vector<8x64xf32>
    %56 = math.exp %55 : vector<8x64xf32>
    %cst_21 = arith.constant 1.000000e+00 : f32
    %57 = vector.broadcast %cst_21 : f32 to vector<8x64xf32>
    %58 = arith.addf %57, %56 : vector<8x64xf32>
    %59 = arith.divf %57, %58 : vector<8x64xf32>
    %60 = vector.extract_strided_slice %59 {offsets = [0, 0], sizes = [8, 32], strides = [1, 1]} : vector<8x64xf32> to vector<8x32xf32>
    %61 = vector.extract_strided_slice %59 {offsets = [0, 32], sizes = [8, 32], strides = [1, 1]} : vector<8x64xf32> to vector<8x32xf32>
    %62 = vector.extract_strided_slice %51 {offsets = [0, 64], sizes = [8, 32], strides = [1, 1]} : vector<8x96xf32> to vector<8x32xf32>
    %63 = arith.mulf %61, %49 : vector<8x32xf32>
    %cst_22 = arith.constant dense<0.000000e+00> : vector<8x32xf32>
    %64 = tpu.matmul %63, %4, %cst_22 {dimension_numbers = #tpu.dot_dimension_numbers<[1], [0], [0], [1], [0, 0, 1, 1], [], []>} : vector<8x32xf32>, vector<32x32xf32>, vector<8x32xf32> -> vector<8x32xf32>
    %65 = arith.addf %62, %64 : vector<8x32xf32>
    %66 = math.tanh %65 : vector<8x32xf32>
    %cst_23 = arith.constant 1.000000e+00 : f32
    %67 = vector.broadcast %cst_23 : f32 to vector<8x32xf32>
    %68 = arith.subf %67, %60 : vector<8x32xf32>
    %69 = arith.mulf %68, %49 : vector<8x32xf32>
    %70 = arith.mulf %60, %66 : vector<8x32xf32>
    %71 = arith.addf %69, %70 : vector<8x32xf32>
    %c3 = arith.constant 3 : index
    %c0_24 = arith.constant 0 : index
    %c0_25 = arith.constant 0 : index
    %72 = vector.load %arg2[%c3, %c0_24, %c0_25] : memref<8x8x96xf32, #tpu.memory_space<vmem>>, vector<1x8x96xf32>
    %73 = vector.shape_cast %72 : vector<1x8x96xf32> to vector<8x96xf32>
    %74 = vector.extract_strided_slice %73 {offsets = [0, 0], sizes = [8, 64], strides = [1, 1]} : vector<8x96xf32> to vector<8x64xf32>
    %cst_26 = arith.constant dense<0.000000e+00> : vector<8x64xf32>
    %75 = tpu.matmul %71, %3, %cst_26 {dimension_numbers = #tpu.dot_dimension_numbers<[1], [0], [0], [1], [0, 0, 1, 1], [], []>} : vector<8x32xf32>, vector<32x64xf32>, vector<8x64xf32> -> vector<8x64xf32>
    %76 = arith.addf %74, %75 : vector<8x64xf32>
    %77 = arith.negf %76 : vector<8x64xf32>
    %78 = math.exp %77 : vector<8x64xf32>
    %cst_27 = arith.constant 1.000000e+00 : f32
    %79 = vector.broadcast %cst_27 : f32 to vector<8x64xf32>
    %80 = arith.addf %79, %78 : vector<8x64xf32>
    %81 = arith.divf %79, %80 : vector<8x64xf32>
    %82 = vector.extract_strided_slice %81 {offsets = [0, 0], sizes = [8, 32], strides = [1, 1]} : vector<8x64xf32> to vector<8x32xf32>
    %83 = vector.extract_strided_slice %81 {offsets = [0, 32], sizes = [8, 32], strides = [1, 1]} : vector<8x64xf32> to vector<8x32xf32>
    %84 = vector.extract_strided_slice %73 {offsets = [0, 64], sizes = [8, 32], strides = [1, 1]} : vector<8x96xf32> to vector<8x32xf32>
    %85 = arith.mulf %83, %71 : vector<8x32xf32>
    %cst_28 = arith.constant dense<0.000000e+00> : vector<8x32xf32>
    %86 = tpu.matmul %85, %4, %cst_28 {dimension_numbers = #tpu.dot_dimension_numbers<[1], [0], [0], [1], [0, 0, 1, 1], [], []>} : vector<8x32xf32>, vector<32x32xf32>, vector<8x32xf32> -> vector<8x32xf32>
    %87 = arith.addf %84, %86 : vector<8x32xf32>
    %88 = math.tanh %87 : vector<8x32xf32>
    %cst_29 = arith.constant 1.000000e+00 : f32
    %89 = vector.broadcast %cst_29 : f32 to vector<8x32xf32>
    %90 = arith.subf %89, %82 : vector<8x32xf32>
    %91 = arith.mulf %90, %71 : vector<8x32xf32>
    %92 = arith.mulf %82, %88 : vector<8x32xf32>
    %93 = arith.addf %91, %92 : vector<8x32xf32>
    %c4 = arith.constant 4 : index
    %c0_30 = arith.constant 0 : index
    %c0_31 = arith.constant 0 : index
    %94 = vector.load %arg2[%c4, %c0_30, %c0_31] : memref<8x8x96xf32, #tpu.memory_space<vmem>>, vector<1x8x96xf32>
    %95 = vector.shape_cast %94 : vector<1x8x96xf32> to vector<8x96xf32>
    %96 = vector.extract_strided_slice %95 {offsets = [0, 0], sizes = [8, 64], strides = [1, 1]} : vector<8x96xf32> to vector<8x64xf32>
    %cst_32 = arith.constant dense<0.000000e+00> : vector<8x64xf32>
    %97 = tpu.matmul %93, %3, %cst_32 {dimension_numbers = #tpu.dot_dimension_numbers<[1], [0], [0], [1], [0, 0, 1, 1], [], []>} : vector<8x32xf32>, vector<32x64xf32>, vector<8x64xf32> -> vector<8x64xf32>
    %98 = arith.addf %96, %97 : vector<8x64xf32>
    %99 = arith.negf %98 : vector<8x64xf32>
    %100 = math.exp %99 : vector<8x64xf32>
    %cst_33 = arith.constant 1.000000e+00 : f32
    %101 = vector.broadcast %cst_33 : f32 to vector<8x64xf32>
    %102 = arith.addf %101, %100 : vector<8x64xf32>
    %103 = arith.divf %101, %102 : vector<8x64xf32>
    %104 = vector.extract_strided_slice %103 {offsets = [0, 0], sizes = [8, 32], strides = [1, 1]} : vector<8x64xf32> to vector<8x32xf32>
    %105 = vector.extract_strided_slice %103 {offsets = [0, 32], sizes = [8, 32], strides = [1, 1]} : vector<8x64xf32> to vector<8x32xf32>
    %106 = vector.extract_strided_slice %95 {offsets = [0, 64], sizes = [8, 32], strides = [1, 1]} : vector<8x96xf32> to vector<8x32xf32>
    %107 = arith.mulf %105, %93 : vector<8x32xf32>
    %cst_34 = arith.constant dense<0.000000e+00> : vector<8x32xf32>
    %108 = tpu.matmul %107, %4, %cst_34 {dimension_numbers = #tpu.dot_dimension_numbers<[1], [0], [0], [1], [0, 0, 1, 1], [], []>} : vector<8x32xf32>, vector<32x32xf32>, vector<8x32xf32> -> vector<8x32xf32>
    %109 = arith.addf %106, %108 : vector<8x32xf32>
    %110 = math.tanh %109 : vector<8x32xf32>
    %cst_35 = arith.constant 1.000000e+00 : f32
    %111 = vector.broadcast %cst_35 : f32 to vector<8x32xf32>
    %112 = arith.subf %111, %104 : vector<8x32xf32>
    %113 = arith.mulf %112, %93 : vector<8x32xf32>
    %114 = arith.mulf %104, %110 : vector<8x32xf32>
    %115 = arith.addf %113, %114 : vector<8x32xf32>
    %c5 = arith.constant 5 : index
    %c0_36 = arith.constant 0 : index
    %c0_37 = arith.constant 0 : index
    %116 = vector.load %arg2[%c5, %c0_36, %c0_37] : memref<8x8x96xf32, #tpu.memory_space<vmem>>, vector<1x8x96xf32>
    %117 = vector.shape_cast %116 : vector<1x8x96xf32> to vector<8x96xf32>
    %118 = vector.extract_strided_slice %117 {offsets = [0, 0], sizes = [8, 64], strides = [1, 1]} : vector<8x96xf32> to vector<8x64xf32>
    %cst_38 = arith.constant dense<0.000000e+00> : vector<8x64xf32>
    %119 = tpu.matmul %115, %3, %cst_38 {dimension_numbers = #tpu.dot_dimension_numbers<[1], [0], [0], [1], [0, 0, 1, 1], [], []>} : vector<8x32xf32>, vector<32x64xf32>, vector<8x64xf32> -> vector<8x64xf32>
    %120 = arith.addf %118, %119 : vector<8x64xf32>
    %121 = arith.negf %120 : vector<8x64xf32>
    %122 = math.exp %121 : vector<8x64xf32>
    %cst_39 = arith.constant 1.000000e+00 : f32
    %123 = vector.broadcast %cst_39 : f32 to vector<8x64xf32>
    %124 = arith.addf %123, %122 : vector<8x64xf32>
    %125 = arith.divf %123, %124 : vector<8x64xf32>
    %126 = vector.extract_strided_slice %125 {offsets = [0, 0], sizes = [8, 32], strides = [1, 1]} : vector<8x64xf32> to vector<8x32xf32>
    %127 = vector.extract_strided_slice %125 {offsets = [0, 32], sizes = [8, 32], strides = [1, 1]} : vector<8x64xf32> to vector<8x32xf32>
    %128 = vector.extract_strided_slice %117 {offsets = [0, 64], sizes = [8, 32], strides = [1, 1]} : vector<8x96xf32> to vector<8x32xf32>
    %129 = arith.mulf %127, %115 : vector<8x32xf32>
    %cst_40 = arith.constant dense<0.000000e+00> : vector<8x32xf32>
    %130 = tpu.matmul %129, %4, %cst_40 {dimension_numbers = #tpu.dot_dimension_numbers<[1], [0], [0], [1], [0, 0, 1, 1], [], []>} : vector<8x32xf32>, vector<32x32xf32>, vector<8x32xf32> -> vector<8x32xf32>
    %131 = arith.addf %128, %130 : vector<8x32xf32>
    %132 = math.tanh %131 : vector<8x32xf32>
    %cst_41 = arith.constant 1.000000e+00 : f32
    %133 = vector.broadcast %cst_41 : f32 to vector<8x32xf32>
    %134 = arith.subf %133, %126 : vector<8x32xf32>
    %135 = arith.mulf %134, %115 : vector<8x32xf32>
    %136 = arith.mulf %126, %132 : vector<8x32xf32>
    %137 = arith.addf %135, %136 : vector<8x32xf32>
    %c6 = arith.constant 6 : index
    %c0_42 = arith.constant 0 : index
    %c0_43 = arith.constant 0 : index
    %138 = vector.load %arg2[%c6, %c0_42, %c0_43] : memref<8x8x96xf32, #tpu.memory_space<vmem>>, vector<1x8x96xf32>
    %139 = vector.shape_cast %138 : vector<1x8x96xf32> to vector<8x96xf32>
    %140 = vector.extract_strided_slice %139 {offsets = [0, 0], sizes = [8, 64], strides = [1, 1]} : vector<8x96xf32> to vector<8x64xf32>
    %cst_44 = arith.constant dense<0.000000e+00> : vector<8x64xf32>
    %141 = tpu.matmul %137, %3, %cst_44 {dimension_numbers = #tpu.dot_dimension_numbers<[1], [0], [0], [1], [0, 0, 1, 1], [], []>} : vector<8x32xf32>, vector<32x64xf32>, vector<8x64xf32> -> vector<8x64xf32>
    %142 = arith.addf %140, %141 : vector<8x64xf32>
    %143 = arith.negf %142 : vector<8x64xf32>
    %144 = math.exp %143 : vector<8x64xf32>
    %cst_45 = arith.constant 1.000000e+00 : f32
    %145 = vector.broadcast %cst_45 : f32 to vector<8x64xf32>
    %146 = arith.addf %145, %144 : vector<8x64xf32>
    %147 = arith.divf %145, %146 : vector<8x64xf32>
    %148 = vector.extract_strided_slice %147 {offsets = [0, 0], sizes = [8, 32], strides = [1, 1]} : vector<8x64xf32> to vector<8x32xf32>
    %149 = vector.extract_strided_slice %147 {offsets = [0, 32], sizes = [8, 32], strides = [1, 1]} : vector<8x64xf32> to vector<8x32xf32>
    %150 = vector.extract_strided_slice %139 {offsets = [0, 64], sizes = [8, 32], strides = [1, 1]} : vector<8x96xf32> to vector<8x32xf32>
    %151 = arith.mulf %149, %137 : vector<8x32xf32>
    %cst_46 = arith.constant dense<0.000000e+00> : vector<8x32xf32>
    %152 = tpu.matmul %151, %4, %cst_46 {dimension_numbers = #tpu.dot_dimension_numbers<[1], [0], [0], [1], [0, 0, 1, 1], [], []>} : vector<8x32xf32>, vector<32x32xf32>, vector<8x32xf32> -> vector<8x32xf32>
    %153 = arith.addf %150, %152 : vector<8x32xf32>
    %154 = math.tanh %153 : vector<8x32xf32>
    %cst_47 = arith.constant 1.000000e+00 : f32
    %155 = vector.broadcast %cst_47 : f32 to vector<8x32xf32>
    %156 = arith.subf %155, %148 : vector<8x32xf32>
    %157 = arith.mulf %156, %137 : vector<8x32xf32>
    %158 = arith.mulf %148, %154 : vector<8x32xf32>
    %159 = arith.addf %157, %158 : vector<8x32xf32>
    %c7 = arith.constant 7 : index
    %c0_48 = arith.constant 0 : index
    %c0_49 = arith.constant 0 : index
    %160 = vector.load %arg2[%c7, %c0_48, %c0_49] : memref<8x8x96xf32, #tpu.memory_space<vmem>>, vector<1x8x96xf32>
    %161 = vector.shape_cast %160 : vector<1x8x96xf32> to vector<8x96xf32>
    %162 = vector.extract_strided_slice %161 {offsets = [0, 0], sizes = [8, 64], strides = [1, 1]} : vector<8x96xf32> to vector<8x64xf32>
    %cst_50 = arith.constant dense<0.000000e+00> : vector<8x64xf32>
    %163 = tpu.matmul %159, %3, %cst_50 {dimension_numbers = #tpu.dot_dimension_numbers<[1], [0], [0], [1], [0, 0, 1, 1], [], []>} : vector<8x32xf32>, vector<32x64xf32>, vector<8x64xf32> -> vector<8x64xf32>
    %164 = arith.addf %162, %163 : vector<8x64xf32>
    %165 = arith.negf %164 : vector<8x64xf32>
    %166 = math.exp %165 : vector<8x64xf32>
    %cst_51 = arith.constant 1.000000e+00 : f32
    %167 = vector.broadcast %cst_51 : f32 to vector<8x64xf32>
    %168 = arith.addf %167, %166 : vector<8x64xf32>
    %169 = arith.divf %167, %168 : vector<8x64xf32>
    %170 = vector.extract_strided_slice %169 {offsets = [0, 0], sizes = [8, 32], strides = [1, 1]} : vector<8x64xf32> to vector<8x32xf32>
    %171 = vector.extract_strided_slice %169 {offsets = [0, 32], sizes = [8, 32], strides = [1, 1]} : vector<8x64xf32> to vector<8x32xf32>
    %172 = vector.extract_strided_slice %161 {offsets = [0, 64], sizes = [8, 32], strides = [1, 1]} : vector<8x96xf32> to vector<8x32xf32>
    %173 = arith.mulf %171, %159 : vector<8x32xf32>
    %cst_52 = arith.constant dense<0.000000e+00> : vector<8x32xf32>
    %174 = tpu.matmul %173, %4, %cst_52 {dimension_numbers = #tpu.dot_dimension_numbers<[1], [0], [0], [1], [0, 0, 1, 1], [], []>} : vector<8x32xf32>, vector<32x32xf32>, vector<8x32xf32> -> vector<8x32xf32>
    %175 = arith.addf %172, %174 : vector<8x32xf32>
    %176 = math.tanh %175 : vector<8x32xf32>
    %cst_53 = arith.constant 1.000000e+00 : f32
    %177 = vector.broadcast %cst_53 : f32 to vector<8x32xf32>
    %178 = arith.subf %177, %170 : vector<8x32xf32>
    %179 = arith.mulf %178, %159 : vector<8x32xf32>
    %180 = arith.mulf %170, %176 : vector<8x32xf32>
    %181 = arith.addf %179, %180 : vector<8x32xf32>
    %c0_54 = arith.constant 0 : index
    %c0_55 = arith.constant 0 : index
    %182 = vector.load %arg6[%c0_54, %c0_55] : memref<8x32xf32, #tpu.memory_space<vmem>>, vector<8x32xf32>
    tpu.vector_store %arg6[%c0_54, %c0_55], %181 {strides = array<i32>} : memref<8x32xf32, #tpu.memory_space<vmem>>, vector<8x32xf32>,
    %c0_56 = arith.constant 0 : index
    %c0_57 = arith.constant 0 : index
    %183 = vector.load %arg5[%c0_56, %c0_57] : memref<8x32xf32, #tpu.memory_space<vmem>>, vector<8x32xf32>
    tpu.vector_store %arg5[%c0_56, %c0_57], %181 {strides = array<i32>} : memref<8x32xf32, #tpu.memory_space<vmem>>, vector<8x32xf32>,
    return
  }
  func.func @transform_0(%arg0: i32, %arg1: i32) -> (i32, i32, i32) {
    %c0_i32 = arith.constant 0 : i32
    %c0_i32_0 = arith.constant 0 : i32
    return %arg1, %arg0, %c0_i32 : i32, i32, i32
  }
  func.func @transform_1(%arg0: i32, %arg1: i32) -> (i32, i32) {
    %c0_i32 = arith.constant 0 : i32
    %c0_i32_0 = arith.constant 0 : i32
    %c0_i32_1 = arith.constant 0 : i32
    return %c0_i32, %c0_i32_0 : i32, i32
  }
  func.func @transform_2(%arg0: i32, %arg1: i32) -> (i32, i32) {
    %c0_i32 = arith.constant 0 : i32
    %c0_i32_0 = arith.constant 0 : i32
    %c0_i32_1 = arith.constant 0 : i32
    return %c0_i32, %c0_i32_0 : i32, i32
  }
  func.func @transform_3(%arg0: i32, %arg1: i32) -> (i32, i32) {
    %c0_i32 = arith.constant 0 : i32
    %c0_i32_0 = arith.constant 0 : i32
    return %arg0, %c0_i32 : i32, i32
  }
}

</mosaic_0001>

<bundles_post_ra>
// kernel: tpu_custom_call.1
= control target key start
LH: loop header
LB: loop body
LE: loop exit
PB: predicated region body
PF: predicated region fallthrough
CT: control target
= control target key end

     0   :  { %s1918_s0 = inlined_call_operand.hbm [shape: f32[16,16,96], index: 0, kind: input, shape index: {}]   ;;  %s1919_s1 = inlined_call_operand.hbm [shape: f32[32,64], index: 1, kind: input, shape index: {}]   ;;  %s1920_s2 = inlined_call_operand.hbm [shape: f32[32,32], index: 2, kind: input, shape index: {}]   ;;  %s1921_s3 = inlined_call_operand.hbm [shape: f32[16,32], index: 3, kind: output, shape index: {}]  }
   0x1   :  { %1931 = sst [smem:[#allocation19_spill]] %s1919_s1 }
   0x2   :  { %1932 = sst [smem:[#allocation20_spill]] %s1920_s2 }
   0x3   :  { %1933 = sst [smem:[#allocation21_spill]] %s1921_s3 }
   0x4   :  { %8 = vsyncpa [#allocation4], 0 }
   0x5   :  { %10 = vsyncpa [#allocation4 + $0x1], 0 }
   0x6   :  { %11 = vsyncpa [#allocation7], 0 }
   0x7   :  { %12 = vsyncpa [#allocation5], 0 }
   0x8   :  { %14 = vsyncpa [#allocation5 + $0x1], 0  ;;  %s1557_s12 = smov 0   ;;  %s1559_s13 = smov 0  }
   0x9   :  { %s1561_s14 = smov 0   ;;  %s1563_s15 = smov 0  }
   0xa   :  { %s1565_s16 = smov 0   ;;  %s1567_s17 = smov 0  }
   0xb   :  { %s1569_s18 = smov 0   ;;  %s1571_s19 = smov 0  }
   0xc   :  { %s1573_s20 = smov 0   ;;  %s1575_s21 = smov 0  }
   0xd   :  { %s1577_s22 = smov 0  }
   0xe LB: > { %1934 = sst [smem:[#allocation13_spill]] %s1486_s12  ;;  %s1080_s23 = sadd.s32 4294967295, %s1526_s22   ;;  %s1526_s22 = sphi %s1577_s22, %s20_s22   ;;  %s1522_s21 = sphi %s1575_s21, %s1964_s21   ;;  %s1518_s20 = sphi %s1573_s20, %s1956_s20   ;;  %s1514_s19 = sphi %s1571_s19, %s1963_s19   ;;  %s1510_s18 = sphi %s1569_s18, %s1955_s18   ;;  %s1506_s17 = sphi %s1567_s17, %s1962_s17   ;;  %s1502_s16 = sphi %s1565_s16, %s1961_s16   ;;  %s1498_s15 = sphi %s1563_s15, %s1960_s15   ;;  %s1494_s14 = sphi %s1561_s14, %s1959_s14   ;;  %s1490_s13 = sphi %s1559_s13, %s1958_s13   ;;  %s1486_s12 = sphi %s1557_s12, %s1957_s12  }
   0xf   : > { %1935 = sst [smem:[#allocation14_spill]] %s1514_s19  ;;  %s1081_s24 = sadd.s32 4294967294, %s1526_s22  }
  0x10   : > { %1936 = sst [smem:[#allocation15_spill]] %s1518_s20  ;;  %p54_p0 = scmp.ne.s32.totalorder %s1502_s16, %s1498_s15 }
  0x11   : > { %p1613_p1 = scmp.eq.s32.totalorder %s1080_s23, 0  ;;  %s109_s26 = sadd.s32 1, %s1494_s14 }
  0x12   : > { %p119_p2 = scmp.ne.s32.totalorder %s1494_s14, %s1490_s13  ;;  %p120_p4 = scmp.eq.s32.totalorder %s1080_s23, 3 }
  0x13   : > { %p1622_p3 = por %p1613_p1, %p54_p0  ;;  %p125_p5 = scmp.ne.s32.totalorder %s1490_s13, %s1486_s12 }
  0x14   : > { %p126_p6 = scmp.eq.s32.totalorder %s1081_s24, 3  ;;  %p1628_p7 = por %p120_p4, %p119_p2 }
  0x15   : > { %p1082_p8 = scmp.ge.s32.totalorder %s1526_s22, 1  ;;  %p133_p10 = scmp.lt.s32.totalorder %s1526_s22, 5 }
  0x16   : > { %s1939_s28 = scalar_select %p1628_p7, 1, 0 }
  0x17   : > { %p1633_p9 = por %p126_p6, %p125_p5  ;;  %s1943_s1 = sld [smem:[#allocation19_spill]] }
  0x18   : > { %1940 = sst [smem:[#allocation16_spill]] %s1939_s28  ;;  %p1641_p11 = pnand %p1082_p8, %p133_p10 }
  0x19   : > { %s1941_s29 = scalar_select %p1633_p9, 1, 0 }
  0x1a   : > { %p1144_p12 = pneg %p1641_p11  ;;  %s1528_s7 = smov [#allocation6]  }
  0x1b   : > { %1942 = sst [smem:[#allocation17_spill]] %s1941_s29  ;;  %s146_s8 = sshll.u32 %s1528_s7, 4  ;;  %s147_s8 = int_to_ptr.vmem [resolvable:$true] %s146_s8 }
  0x1c   : > { %p1145_p13 = pnand %p1144_p12, %p1613_p1  ;;  %s1945_s2 = sld [smem:[#allocation20_spill]] }
  0x1d   : > { %s144_s5 = sshll.u32 %s1943_s1, 4  ;;  %s1922_s15 = smov 128   ;;  %s145_s5 = int_to_ptr.hbm [resolvable:$true] %s144_s5 }
  0x1e   : > { %s1923_s23 = smov 8   ;;  %s1531_s24 = smov [#allocation8]  }
  0x1f   : > { %1147 = dma.hbm_to_vmem [thread:$0]  (!%p1145_p13), %s145_s5, 512, %s147_s8, [#allocation7], %s1922_s15, %s1922_s15, %s1923_s23  }
  0x20   : > { %s160_s30 = sshll.u32 %s1531_s24, 4  ;;  %s29_s4 = sadd.s32 1, %s1518_s20  ;;  %s161_s30 = int_to_ptr.vmem [resolvable:$true] %s160_s30 }
  0x21   : > { %s32_s7 = sadd.s32 1, %s1522_s21  ;;  %p30_p0 = scmp.ge.s32.totalorder %s29_s4, 2 }
  0x22   : > { %s158_s11 = sshll.u32 %s1945_s2, 4  ;;  %s41_s9 = sadd.s32 1, %s1506_s17  ;;  %s159_s11 = int_to_ptr.hbm [resolvable:$true] %s158_s11 }
  0x23   : > { %1150 = dma.hbm_to_vmem [thread:$0]  (!%p1145_p13), %s159_s11, 512, %s161_s30, [#allocation7], %s1922_s15, %s1922_s15, %s1923_s23  }
  0x24   : > { %p48_p2 = scmp.ne.s32.totalorder %s1506_s17, %s1502_s16  ;;  %p49_p4 = scmp.eq.s32.totalorder %s1526_s22, 0 }
  0x25   : > { %s1966_s4 = smov (%p30_p0, %s29_s4), 0  ;;  %s1968_s7 = smov (!%p30_p0, %s32_s7), %s1522_s21 }
  0x26   : > { %1946 = sst [smem:[#allocation18_spill]] %s1966_s4  ;;  %s36_s5 = ssub.s32 %s1518_s20, %s1966_s4 }
  0x27   : > { %p1669_p5 = por %p49_p4, %p48_p2  ;;  %p34_p6 = scmp.ge.s32.totalorder %s1968_s7, 2 }
  0x28   : > { %p1161_p8 = scmp.lt.s32.totalorder %s1526_s22, 4  ;;  %s174_s10 = sand.u32 1, %s1506_s17  }
  0x29   : > { %s1131_s11 = sshll.u32 %s1518_s20, 4  ;;  %s1970_s7 = smov (%p34_p6, %s1968_s7), 0 }
  0x2a   : > { %s1086_s24 = sshll.u32 %s174_s10, 6  ;;  %s37_s30 = ssub.s32 %s1522_s21, %s1970_s7 }
  0x2b   : > { %s38_s15 = sor.u32 %s37_s30, %s36_s5  ;;  %p107_p10 = scmp.eq.s32.totalorder %s37_s30, 0 }
  0x2c   : > { %p39_p12 = scmp.eq.s32.totalorder %s38_s15, 0  ;;  %s183_s23 = sadd.s32 %s1522_s21, %s1131_s11 }
  0x2d   : > { %s1684_s1 = scalar_select %p107_p10, %s1494_s14, %s109_s26  }
  0x2e   : > { %s1687_s2 = scalar_select %p39_p12, %s1506_s17, %s41_s9  }
  0x2f   : > { %s1089_s4 = sshll.u32 %s183_s23, 3  ;;  %s178_s29 = scalar_lea.vmem [#allocation3], %s1086_s24 }
  0x30   : > { %s188_s12 = sshll.u32 %s178_s29, 4  ;;  %s185_s3 = scalar_lea.hbm %s1918_s0, %s1089_s4  ;;  %s189_s12 = int_to_ptr.vmem [resolvable:$true] %s188_s12 }
  0x31   : > { %s186_s19 = sshll.u32 %s185_s3, 4  ;;  %p1152_p13 = pnand %p1161_p8, %p1669_p5  ;;  %s187_s19 = int_to_ptr.hbm [resolvable:$true] %s186_s19 }
  0x32   : > { %s175_s15 = scalar_lea.sflag [#allocation4], %s174_s10  ;;  %s1532_s5 = smov 256  }
  0x33   : > { %s1948_s11 = smov 8   ;;  %s1949_s26 = smov 128  }
  0x34   : > { %1154 = dma.hbm_to_vmem [thread:$0]  (!%p1152_p13), %s187_s19, 1024, %s189_s12, %s175_s15, %s1532_s5, %s1949_s26, %s1948_s11  }
  0x35   : > { %200 = sbr.rel (%p1641_p11) target bundleno = 5098 (0x13ea), region = 32  ;;  %s202_s29 = sand.u32 (!%p1641_p11), 1, %s1502_s16  }
  0x36   : > { %s1091_s23 = sshll.u32 (!%p1641_p11), %s202_s29, 6  ;;  %s203_s20 = scalar_lea.sflag (!%p1641_p11), [#allocation4], %s202_s29 }
  0x37   : > { %s1701_s28 = scalar_lea.vmem (!%p1641_p11), [#allocation3], %s1091_s23 }
  0x3a   : > { %1473 = dma.done.wait (%p1622_p3), %s203_s20, 1024  }
  0x3b   : > { %1475 = vsyncadd (%p1622_p3), %s203_s20, 4294966272 }
  0x3c   : > { %1477 = dma.done.wait (%p1613_p1), [#allocation7], 1024  }
  0x3d   : > { %1479 = vsyncadd (%p1613_p1), [#allocation7], 4294966272  ;;  %s237_s3 = sand.u32 1, %s1490_s13   ;;  %p1095_p11 = scmp.ne.s32.totalorder %s1510_s18, 0 }
  0x3e   : > { %s1714_s12 = sshll.u32 %s237_s3, 3 }
  0x3f   : > { %s239_s19 = scalar_lea.vmem [#allocation9], %s1714_s12  ;;  %244 = sbr.rel (%p1095_p11) target bundleno = 70 (0x46), region = 48 }
  0x44   : > { %vm245_vm0 = vcmask 261120   ;;  %v1533_v0 = vmov 0.0  }
  0x45   : > { %246 = vst.msk [vmem:[#allocation2] sm:$0xff] %vm245_vm0, %v1533_v0 }
  0x46 PF: > { %v1718_v1 = vld [vmem:[#allocation6 + $0x18] sm:$0xff]  ;;  %v1720_v2 = vld [vmem:[#allocation6 + $0x10] sm:$0xff]  ;;  %v1726_v4 = vld [vmem:[#allocation6 + $0x8] sm:$0xff]  ;;  %s1534_s25 = smov 32   ;;  %vm257_vm1 = vcmask 261120   ;;  %s1535_s18 = smov 96  }
  0x47   : > { %273 = vmatpush.msra.mxu0 %v1718_v1  ;;  %361 = vmatpush.msra.mxu2 %v1718_v1  ;;  %v1732_v5 = vld [vmem:[#allocation6] sm:$0xff]  ;;  %v1753_v9 = vld [vmem:[#allocation8 + $0x18] sm:$0xff]  ;;  %v1755_v10 = vld [vmem:[#allocation8 + $0x10] sm:$0xff]  ;;  %s1536_s27 = smov 64   ;;  %s1950_s6 = sld [smem:[#allocation14_spill]] }
  0x48   : > { %v256_v6 = vld [vmem:[%s1701_s28] sm:$0xff]  ;;  %322 = vmatpush.msra.mxu1 %v1753_v9  ;;  %410 = vmatpush.msra.mxu3 %v1753_v9  ;;  %v1759_v12 = vld [vmem:[#allocation8 + $0x8] sm:$0xff]  ;;  %s1951_s10 = sld [smem:[#allocation21_spill]]  ;;  %s975_s15 = sshll.u32 %s239_s19, 4  ;;  %s976_s15 = int_to_ptr.vmem [resolvable:$true] %s975_s15 }
  0x49   : > { %274 = vmatpush.msra.mxu0 %v1720_v2  ;;  %362 = vmatpush.msra.mxu2 %v1720_v2  ;;  %v1763_v13 = vld [vmem:[#allocation8] sm:$0xff]  ;;  %v1099_v38 = vld [vmem:[%s1701_s28 + $0x8] sm:$0xff]  ;;  %s963_s11 = scalar_lea.sflag [#allocation5], %s237_s3 }
  0x4a   : > { %323 = vmatpush.msra.mxu1 %v1755_v10  ;;  %411 = vmatpush.msra.mxu3 %v1755_v10 }
  0x4b   : > { %275 = vmatpush.msra.mxu0 %v1726_v4  ;;  %363 = vmatpush.msra.mxu2 %v1726_v4 }
  0x4c   : > { %v1723_v3 = vld [vmem:[#allocation2] sm:$0xff]  ;;  %324 = vmatpush.msra.mxu1 %v1759_v12  ;;  %412 = vmatpush.msra.mxu3 %v1759_v12 }
  0x4d   : > { %301 = vrot.lane.b32.xlu0 %v1723_v3, %s1534_s25  ;;  %276 = vmatpush.msra.mxu0 %v1732_v5  ;;  %s1128_s4 = sshll.u32 %s1950_s6, 3 }
  0x4e   : > { %364 = vmatpush.msra.mxu2 %v1732_v5  ;;  %1096 = vmatmul.msk.f32.vlgmr.msra.gmra.mxu0 %vm257_vm1, %v1723_v3  ;;  %s973_s24 = scalar_lea.hbm %s1951_s10, %s1128_s4 }
  0x4f   : > { %449 = vmatpush.msrb.mxu0 %v1718_v1  ;;  %325 = vmatpush.msra.mxu1 %v1763_v13  ;;  %s977_s5 = sshll.u32 %s973_s24, 4  ;;  %s978_s5 = int_to_ptr.hbm [resolvable:$true] %s977_s5 }
  0x50   : > { %537 = vmatpush.msrb.mxu2 %v1718_v1  ;;  %413 = vmatpush.msra.mxu3 %v1763_v13  ;;  %s1414_s26 = sshra.s32 %s978_s5, 4  ;;  %s1415_s26 = int_to_ptr.hbm [resolvable:$true] %s1414_s26 }
  0x51   : > { %450 = vmatpush.msrb.mxu0 %v1720_v2  ;;  %498 = vmatpush.msrb.mxu1 %v1753_v9  ;;  %s1416_s29 = scalar_lea.hbm %s1415_s26, 8  ;;  %p1421_p2 = scmp.lt.s32.totalorder %s1415_s26, %s1951_s10 }
  0x52   : > { %538 = vmatpush.msrb.mxu2 %v1720_v2  ;;  %586 = vmatpush.msrb.mxu3 %v1753_v9  ;;  %p1417_p1 = scmp.ne.s32.totalorder %s1415_s26, %s1416_s29 }
  0x53   : > { %451 = vmatpush.msrb.mxu0 %v1726_v4  ;;  %499 = vmatpush.msrb.mxu1 %v1755_v10 }
  0x54   : > { %539 = vmatpush.msrb.mxu2 %v1726_v4  ;;  %587 = vmatpush.msrb.mxu3 %v1755_v10  ;;  %p1418_p3 = pnand %p1417_p1, %p1628_p7 }
  0x55   : > { %452 = vmatpush.msrb.mxu0 %v1732_v5  ;;  %500 = vmatpush.msrb.mxu1 %v1759_v12 }
  0x56   : > { %540 = vmatpush.msrb.mxu2 %v1732_v5  ;;  %588 = vmatpush.msrb.mxu3 %v1759_v12  ;;  %p1419_p0 = pneg %p1418_p3 }
  0x57   : > { %625 = vmatpush.msra.mxu0 %v1718_v1  ;;  %501 = vmatpush.msrb.mxu1 %v1763_v13 }
  0x58   : > { %589 = vmatpush.msrb.mxu3 %v1763_v13 }
  0x59   : > { %626 = vmatpush.msra.mxu0 %v1720_v2 }
  0x5b   : > { %627 = vmatpush.msra.mxu0 %v1726_v4 }
  0x5d   : > { %628 = vmatpush.msra.mxu0 %v1732_v5 }
  0xbf   : > { %v302_v23 = vpop.permute.xlu0 %301 }
  0xcb   : > { %v278_v7 = vpop.f32.mrf.mxu0 }
  0xcc   : > { %v281_v8 = vadd.f32 %v278_v7, %v256_v6 }
  0xce   : > { %v1097_v11 = vmul.f32 -1.442695, %v281_v8 }
  0xd0   : > { %1262 = vpow2.f32 %v1097_v11 }
  0xd6   : > { %v1263_v14 = vpop.eup %1262 }
  0xd7   : > { %v285_v15 = vadd.f32 1.0, %v1263_v14 }
  0xd9   : > { %1264 = vrcp.f32 %v285_v15  ;;  %v297_v19 = vand.u32 2147483648, %v285_v15  ;;  %v295_v21 = vand.u32 2147483647, %v285_v15  ;;  %vm291_vm3 = vweird.f32 %v285_v15 }
  0xdb   : > { %v298_v24 = vor.u32 1.1754944e-38, %v297_v19  ;;  %vm296_vm5 = vcmp.eq.f32.partialorder %v295_v21, 8.507059e+37 }
  0xdf   : > { %v1265_v16 = vpop.eup %1264 }
  0xe0   : > { %v287_v17 = vmul.f32 %v1265_v16, %v285_v15  ;;  %vm292_vm2 = vweird.f32 %v1265_v16 }
  0xe1   : > { %vm293_vm4 = vmor %vm291_vm3, %vm292_vm2 }
  0xe2   : > { %v288_v18 = vsub.f32 1.0, %v287_v17 }
  0xe4   : > { %v289_v20 = vmul.f32 %v1265_v16, %v288_v18 }
  0xe6   : > { %v290_v22 = vadd.f32 %v1265_v16, %v289_v20 }
  0xe8   : > { %v294_v25 = vsel %vm293_vm4, %v1265_v16, %v290_v22 }
  0xe9   : > { %v299_v26 = vsel %vm296_vm5, %v298_v24, %v294_v25 }
  0xea   : > { %v304_v27 = vmul.f32 %v302_v23, %v299_v26  ;;  %v336_v33 = vsub.f32 1.0, %v299_v26 }
  0xec   : > { %306 = vrot.lane.b32.xlu0 %v304_v27, %s1535_s18  ;;  %v337_v35 = vmul.f32 %v336_v33, %v1723_v3 }
 0x15e   : > { %v307_v28 = vpop.permute.xlu0 %306 }
 0x15f   : > { %1098 = vmatmul.msk.f32.vlgmr.msra.gmra.mxu1 %vm257_vm1, %v307_v28 }
 0x160   : > { %674 = vmatpush.msra.mxu1 %v1753_v9 }
 0x162   : > { %675 = vmatpush.msra.mxu1 %v1755_v10 }
 0x164   : > { %676 = vmatpush.msra.mxu1 %v1759_v12 }
 0x166   : > { %677 = vmatpush.msra.mxu1 %v1763_v13 }
 0x1dc   : > { %v327_v29 = vpop.f32.mrf.mxu1 }
 0x1dd   : > { %331 = vrot.lane.b32.xlu1 %v327_v29, %s1536_s27 }
 0x24f   : > { %v332_v30 = vpop.permute.xlu1 %331 }
 0x250   : > { %v334_v31 = vadd.f32 %v332_v30, %v256_v6  ;;  %v1103_v6 = vld [vmem:[%s1701_s28 + $0x10] sm:$0xff] }
 0x252   : > { %1266 = vtanh.f32 %v334_v31 }
 0x258   : > { %v1267_v32 = vpop.eup %1266 }
 0x259   : > { %339 = vrot.lane.b32.xlu1 %v1267_v32, %s1536_s27 }
 0x2cb   : > { %v340_v34 = vpop.permute.xlu1 %339 }
 0x2cc   : > { %v342_v36 = vmul.f32 %v340_v34, %v299_v26 }
 0x2ce   : > { %v343_v37 = vadd.f32 %v342_v36, %v337_v35 }
 0x2d0   : > { %389 = vrot.lane.b32.xlu2 %v343_v37, %s1534_s25  ;;  %1100 = vmatmul.msk.f32.vlgmr.msra.gmra.mxu2 %vm257_vm1, %v343_v37 }
 0x2d1   : > { %713 = vmatpush.msra.mxu2 %v1718_v1 }
 0x2d3   : > { %714 = vmatpush.msra.mxu2 %v1720_v2 }
 0x2d5   : > { %715 = vmatpush.msra.mxu2 %v1726_v4 }
 0x2d7   : > { %716 = vmatpush.msra.mxu2 %v1732_v5 }
 0x32a   : > { %v390_v53 = vpop.permute.xlu2 %389 }
 0x353   : > { %v366_v39 = vpop.f32.mrf.mxu2 }
 0x354   : > { %v369_v40 = vadd.f32 %v1099_v38, %v366_v39 }
 0x356   : > { %v1101_v41 = vmul.f32 -1.442695, %v369_v40 }
 0x358   : > { %1268 = vpow2.f32 %v1101_v41 }
 0x35e   : > { %v1269_v42 = vpop.eup %1268 }
 0x35f   : > { %v373_v43 = vadd.f32 1.0, %v1269_v42 }
 0x361   : > { %1270 = vrcp.f32 %v373_v43  ;;  %v385_v47 = vand.u32 2147483648, %v373_v43  ;;  %v383_v49 = vand.u32 2147483647, %v373_v43  ;;  %vm379_vm7 = vweird.f32 %v373_v43 }
 0x363   : > { %v386_v51 = vor.u32 1.1754944e-38, %v385_v47  ;;  %vm384_vm9 = vcmp.eq.f32.partialorder %v383_v49, 8.507059e+37 }
 0x367   : > { %v1271_v44 = vpop.eup %1270 }
 0x368   : > { %v375_v45 = vmul.f32 %v1271_v44, %v373_v43  ;;  %vm380_vm6 = vweird.f32 %v1271_v44 }
 0x369   : > { %vm381_vm8 = vmor %vm379_vm7, %vm380_vm6 }
 0x36a   : > { %v376_v46 = vsub.f32 1.0, %v375_v45 }
 0x36c   : > { %v377_v48 = vmul.f32 %v1271_v44, %v376_v46 }
 0x36e   : > { %v378_v50 = vadd.f32 %v1271_v44, %v377_v48 }
 0x370   : > { %v382_v52 = vsel %vm381_vm8, %v1271_v44, %v378_v50 }
 0x371   : > { %v387_v54 = vsel %vm384_vm9, %v386_v51, %v382_v52 }
 0x372   : > { %v392_v55 = vmul.f32 %v390_v53, %v387_v54  ;;  %v424_v61 = vsub.f32 1.0, %v387_v54 }
 0x374   : > { %394 = vrot.lane.b32.xlu2 %v392_v55, %s1535_s18  ;;  %v425_v63 = vmul.f32 %v424_v61, %v343_v37 }
 0x3ce   : > { %v395_v56 = vpop.permute.xlu2 %394 }
 0x3cf   : > { %1102 = vmatmul.msk.f32.vlgmr.msra.gmra.mxu3 %vm257_vm1, %v395_v56 }
 0x3d0   : > { %762 = vmatpush.msra.mxu3 %v1753_v9 }
 0x3d2   : > { %763 = vmatpush.msra.mxu3 %v1755_v10 }
 0x3d4   : > { %764 = vmatpush.msra.mxu3 %v1759_v12 }
 0x3d6   : > { %765 = vmatpush.msra.mxu3 %v1763_v13 }
 0x452   : > { %v415_v57 = vpop.f32.mrf.mxu3 }
 0x453   : > { %419 = vrot.lane.b32.xlu0 %v415_v57, %s1536_s27 }
 0x4c5   : > { %v420_v58 = vpop.permute.xlu0 %419 }
 0x4c6   : > { %v422_v59 = vadd.f32 %v1099_v38, %v420_v58  ;;  %v1107_v38 = vld [vmem:[%s1701_s28 + $0x18] sm:$0xff] }
 0x4c8   : > { %1272 = vtanh.f32 %v422_v59 }
 0x4ce   : > { %v1273_v60 = vpop.eup %1272 }
 0x4cf   : > { %427 = vrot.lane.b32.xlu1 %v1273_v60, %s1536_s27 }
 0x541   : > { %v428_v62 = vpop.permute.xlu1 %427 }
 0x542   : > { %v430_v0 = vmul.f32 %v428_v62, %v387_v54 }
 0x544   : > { %v431_v3 = vadd.f32 %v430_v0, %v425_v63 }
 0x546   : > { %477 = vrot.lane.b32.xlu2 %v431_v3, %s1534_s25  ;;  %1104 = vmatmul.msk.f32.vlgmr.msrb.gmra.mxu0 %vm257_vm1, %v431_v3 }
 0x547   : > { %801 = vmatpush.msrb.mxu0 %v1718_v1 }
 0x549   : > { %802 = vmatpush.msrb.mxu0 %v1720_v2 }
 0x54b   : > { %803 = vmatpush.msrb.mxu0 %v1726_v4 }
 0x54d   : > { %804 = vmatpush.msrb.mxu0 %v1732_v5 }
 0x5a0   : > { %v478_v25 = vpop.permute.xlu2 %477 }
 0x5c3   : > { %v454_v7 = vpop.f32.mrf.mxu0 }
 0x5c4   : > { %v457_v8 = vadd.f32 %v1103_v6, %v454_v7 }
 0x5c6   : > { %v1105_v11 = vmul.f32 -1.442695, %v457_v8 }
 0x5c8   : > { %1274 = vpow2.f32 %v1105_v11 }
 0x5ce   : > { %v1275_v14 = vpop.eup %1274 }
 0x5cf   : > { %v461_v15 = vadd.f32 1.0, %v1275_v14 }
 0x5d1   : > { %1276 = vrcp.f32 %v461_v15  ;;  %v473_v19 = vand.u32 2147483648, %v461_v15  ;;  %v471_v21 = vand.u32 2147483647, %v461_v15  ;;  %vm467_vm11 = vweird.f32 %v461_v15 }
 0x5d3   : > { %v474_v23 = vor.u32 1.1754944e-38, %v473_v19  ;;  %vm472_vm13 = vcmp.eq.f32.partialorder %v471_v21, 8.507059e+37 }
 0x5d7   : > { %v1277_v16 = vpop.eup %1276 }
 0x5d8   : > { %v463_v17 = vmul.f32 %v1277_v16, %v461_v15  ;;  %vm468_vm10 = vweird.f32 %v1277_v16 }
 0x5d9   : > { %vm469_vm12 = vmor %vm467_vm11, %vm468_vm10 }
 0x5da   : > { %v464_v18 = vsub.f32 1.0, %v463_v17 }
 0x5dc   : > { %v465_v20 = vmul.f32 %v1277_v16, %v464_v18 }
 0x5de   : > { %v466_v22 = vadd.f32 %v1277_v16, %v465_v20 }
 0x5e0   : > { %v470_v24 = vsel %vm469_vm12, %v1277_v16, %v466_v22 }
 0x5e1   : > { %v475_v26 = vsel %vm472_vm13, %v474_v23, %v470_v24 }
 0x5e2   : > { %v480_v27 = vmul.f32 %v478_v25, %v475_v26  ;;  %v512_v33 = vsub.f32 1.0, %v475_v26 }
 0x5e4   : > { %482 = vrot.lane.b32.xlu0 %v480_v27, %s1535_s18  ;;  %v513_v35 = vmul.f32 %v512_v33, %v431_v3 }
 0x656   : > { %v483_v28 = vpop.permute.xlu0 %482 }
 0x657   : > { %1106 = vmatmul.msk.f32.vlgmr.msrb.gmra.mxu1 %vm257_vm1, %v483_v28 }
 0x658   : > { %850 = vmatpush.msrb.mxu1 %v1753_v9 }
 0x65a   : > { %851 = vmatpush.msrb.mxu1 %v1755_v10 }
 0x65c   : > { %852 = vmatpush.msrb.mxu1 %v1759_v12 }
 0x65e   : > { %853 = vmatpush.msrb.mxu1 %v1763_v13 }
 0x6d4   : > { %v503_v29 = vpop.f32.mrf.mxu1 }
 0x6d5   : > { %507 = vrot.lane.b32.xlu1 %v503_v29, %s1536_s27 }
 0x747   : > { %v508_v30 = vpop.permute.xlu1 %507 }
 0x748   : > { %v510_v31 = vadd.f32 %v1103_v6, %v508_v30  ;;  %v1115_v30 = vld [vmem:[%s1701_s28 + $0x28] sm:$0xff] }
 0x74a   : > { %1278 = vtanh.f32 %v510_v31 }
 0x750   : > { %v1279_v32 = vpop.eup %1278 }
 0x751   : > { %515 = vrot.lane.b32.xlu2 %v1279_v32, %s1536_s27 }
 0x7ab   : > { %v516_v34 = vpop.permute.xlu2 %515 }
 0x7ac   : > { %v518_v36 = vmul.f32 %v516_v34, %v475_v26 }
 0x7ae   : > { %v519_v37 = vadd.f32 %v518_v36, %v513_v35 }
 0x7b0   : > { %565 = vrot.lane.b32.xlu0 %v519_v37, %s1534_s25  ;;  %1108 = vmatmul.msk.f32.vlgmr.msrb.gmra.mxu2 %vm257_vm1, %v519_v37 }
 0x7b1   : > { %889 = vmatpush.msrb.mxu2 %v1718_v1 }
 0x7b3   : > { %890 = vmatpush.msrb.mxu2 %v1720_v2 }
 0x7b5   : > { %891 = vmatpush.msrb.mxu2 %v1726_v4 }
 0x7b7   : > { %892 = vmatpush.msrb.mxu2 %v1732_v5 }
 0x822   : > { %v566_v49 = vpop.permute.xlu0 %565 }
 0x833   : > { %v542_v39 = vpop.f32.mrf.mxu2 }
 0x834   : > { %v545_v40 = vadd.f32 %v1107_v38, %v542_v39 }
 0x836   : > { %v1109_v41 = vmul.f32 -1.442695, %v545_v40 }
 0x838   : > { %1280 = vpow2.f32 %v1109_v41 }
 0x83e   : > { %v1281_v42 = vpop.eup %1280 }
 0x83f   : > { %v549_v43 = vadd.f32 1.0, %v1281_v42 }
 0x841   : > { %1282 = vrcp.f32 %v549_v43  ;;  %v561_v47 = vand.u32 2147483648, %v549_v43  ;;  %v559_v1 = vand.u32 2147483647, %v549_v43  ;;  %vm555_vm15 = vweird.f32 %v549_v43 }
 0x843   : > { %v562_v4 = vor.u32 1.1754944e-38, %v561_v47  ;;  %vm560_vm2 = vcmp.eq.f32.partialorder %v559_v1, 8.507059e+37 }
 0x847   : > { %v1283_v44 = vpop.eup %1282 }
 0x848   : > { %v551_v45 = vmul.f32 %v1283_v44, %v549_v43  ;;  %vm556_vm14 = vweird.f32 %v1283_v44 }
 0x849   : > { %vm557_vm0 = vmor %vm555_vm15, %vm556_vm14 }
 0x84a   : > { %v552_v46 = vsub.f32 1.0, %v551_v45 }
 0x84c   : > { %v553_v48 = vmul.f32 %v1283_v44, %v552_v46 }
 0x84e   : > { %v554_v2 = vadd.f32 %v1283_v44, %v553_v48 }
 0x850   : > { %v558_v5 = vsel %vm557_vm0, %v1283_v44, %v554_v2 }
 0x851   : > { %v563_v50 = vsel %vm560_vm2, %v562_v4, %v558_v5 }
 0x852   : > { %v568_v51 = vmul.f32 %v566_v49, %v563_v50  ;;  %v600_v57 = vsub.f32 1.0, %v563_v50 }
 0x854   : > { %570 = vrot.lane.b32.xlu1 %v568_v51, %s1535_s18  ;;  %v601_v59 = vmul.f32 %v600_v57, %v519_v37 }
 0x8c6   : > { %v571_v52 = vpop.permute.xlu1 %570 }
 0x8c7   : > { %1110 = vmatmul.msk.f32.vlgmr.msrb.gmra.mxu3 %vm257_vm1, %v571_v52 }
 0x8c8   : > { %938 = vmatpush.msrb.mxu3 %v1753_v9 }
 0x8ca   : > { %939 = vmatpush.msrb.mxu3 %v1755_v10  ;;  %v1111_v10 = vld [vmem:[%s1701_s28 + $0x20] sm:$0xff] }
 0x8cc   : > { %940 = vmatpush.msrb.mxu3 %v1759_v12 }
 0x8ce   : > { %941 = vmatpush.msrb.mxu3 %v1763_v13 }
 0x94a   : > { %v591_v53 = vpop.f32.mrf.mxu3 }
 0x94b   : > { %595 = vrot.lane.b32.xlu2 %v591_v53, %s1536_s27 }
 0x9a5   : > { %v596_v54 = vpop.permute.xlu2 %595 }
 0x9a6   : > { %v598_v55 = vadd.f32 %v1107_v38, %v596_v54  ;;  %v1119_v54 = vld [vmem:[%s1701_s28 + $0x30] sm:$0xff] }
 0x9a8   : > { %1284 = vtanh.f32 %v598_v55 }
 0x9ae   : > { %v1285_v56 = vpop.eup %1284 }
 0x9af   : > { %603 = vrot.lane.b32.xlu0 %v1285_v56, %s1536_s27 }
 0xa21   : > { %v604_v58 = vpop.permute.xlu0 %603 }
 0xa22   : > { %v606_v9 = vmul.f32 %v604_v58, %v563_v50 }
 0xa24   : > { %v607_v60 = vadd.f32 %v606_v9, %v601_v59 }
 0xa26   : > { %653 = vrot.lane.b32.xlu1 %v607_v60, %s1534_s25  ;;  %1112 = vmatmul.msk.f32.vlgmr.msra.gmra.mxu0 %vm257_vm1, %v607_v60 }
 0xa98   : > { %v654_v17 = vpop.permute.xlu1 %653 }
 0xaa3   : > { %v630_v12 = vpop.f32.mrf.mxu0 }
 0xaa4   : > { %v633_v13 = vadd.f32 %v1111_v10, %v630_v12 }
 0xaa6   : > { %v1113_v61 = vmul.f32 -1.442695, %v633_v13 }
 0xaa8   : > { %1286 = vpow2.f32 %v1113_v61 }
 0xaae   : > { %v1287_v62 = vpop.eup %1286 }
 0xaaf   : > { %v637_v63 = vadd.f32 1.0, %v1287_v62 }
 0xab1   : > { %1288 = vrcp.f32 %v637_v63  ;;  %v649_v7 = vand.u32 2147483648, %v637_v63  ;;  %v647_v11 = vand.u32 2147483647, %v637_v63  ;;  %vm643_vm4 = vweird.f32 %v637_v63 }
 0xab3   : > { %v650_v15 = vor.u32 1.1754944e-38, %v649_v7  ;;  %vm648_vm6 = vcmp.eq.f32.partialorder %v647_v11, 8.507059e+37 }
 0xab7   : > { %v1289_v0 = vpop.eup %1288 }
 0xab8   : > { %v639_v3 = vmul.f32 %v1289_v0, %v637_v63  ;;  %vm644_vm3 = vweird.f32 %v1289_v0 }
 0xab9   : > { %vm645_vm5 = vmor %vm643_vm4, %vm644_vm3 }
 0xaba   : > { %v640_v6 = vsub.f32 1.0, %v639_v3 }
 0xabc   : > { %v641_v8 = vmul.f32 %v1289_v0, %v640_v6 }
 0xabe   : > { %v642_v14 = vadd.f32 %v1289_v0, %v641_v8 }
 0xac0   : > { %v646_v16 = vsel %vm645_vm5, %v1289_v0, %v642_v14 }
 0xac1   : > { %v651_v18 = vsel %vm648_vm6, %v650_v15, %v646_v16 }
 0xac2   : > { %v656_v19 = vmul.f32 %v654_v17, %v651_v18  ;;  %v688_v25 = vsub.f32 1.0, %v651_v18 }
 0xac4   : > { %658 = vrot.lane.b32.xlu2 %v656_v19, %s1535_s18  ;;  %v689_v27 = vmul.f32 %v688_v25, %v607_v60 }
 0xb1e   : > { %v659_v20 = vpop.permute.xlu2 %658 }
 0xb1f   : > { %1114 = vmatmul.msk.f32.vlgmr.msra.gmra.mxu1 %vm257_vm1, %v659_v20 }
 0xb9c   : > { %v679_v21 = vpop.f32.mrf.mxu1 }
 0xb9d   : > { %683 = vrot.lane.b32.xlu0 %v679_v21, %s1536_s27 }
 0xc0f   : > { %v684_v22 = vpop.permute.xlu0 %683 }
 0xc10   : > { %v686_v23 = vadd.f32 %v1111_v10, %v684_v22  ;;  %v1123_v22 = vld [vmem:[%s1701_s28 + $0x38] sm:$0xff]  ;;  %s1420_s28 = scalar_lea.hbm %s1951_s10, 16 }
 0xc11   : > { %p1422_p4 = scmp.lt.s32.totalorder %s1420_s28, %s1416_s29 }
 0xc12   : > { %1290 = vtanh.f32 %v686_v23 }
 0xc13   : > { %p1423_p5 = por %p1422_p4, %p1421_p2 }
 0xc15   : > { %p1424_p6 = pnand %p1423_p5, %p1419_p0 }
 0xc18   : > { %v1291_v24 = vpop.eup %1290 }
 0xc19   : > { %691 = vrot.lane.b32.xlu1 %v1291_v24, %s1536_s27 }
 0xc8b   : > { %v692_v26 = vpop.permute.xlu1 %691 }
 0xc8c   : > { %v694_v28 = vmul.f32 %v692_v26, %v651_v18 }
 0xc8e   : > { %v695_v29 = vadd.f32 %v694_v28, %v689_v27 }
 0xc90   : > { %741 = vrot.lane.b32.xlu2 %v695_v29, %s1534_s25  ;;  %1116 = vmatmul.msk.f32.vlgmr.msra.gmra.mxu2 %vm257_vm1, %v695_v29 }
 0xcea   : > { %v742_v45 = vpop.permute.xlu2 %741 }
 0xd13   : > { %v718_v31 = vpop.f32.mrf.mxu2 }
 0xd14   : > { %v721_v32 = vadd.f32 %v1115_v30, %v718_v31 }
 0xd16   : > { %v1117_v33 = vmul.f32 -1.442695, %v721_v32 }
 0xd18   : > { %1292 = vpow2.f32 %v1117_v33 }
 0xd1e   : > { %v1293_v34 = vpop.eup %1292 }
 0xd1f   : > { %v725_v35 = vadd.f32 1.0, %v1293_v34 }
 0xd21   : > { %1294 = vrcp.f32 %v725_v35  ;;  %v737_v39 = vand.u32 2147483648, %v725_v35  ;;  %v735_v41 = vand.u32 2147483647, %v725_v35  ;;  %vm731_vm8 = vweird.f32 %v725_v35 }
 0xd23   : > { %v738_v43 = vor.u32 1.1754944e-38, %v737_v39  ;;  %vm736_vm10 = vcmp.eq.f32.partialorder %v735_v41, 8.507059e+37 }
 0xd27   : > { %v1295_v36 = vpop.eup %1294 }
 0xd28   : > { %v727_v37 = vmul.f32 %v1295_v36, %v725_v35  ;;  %vm732_vm7 = vweird.f32 %v1295_v36 }
 0xd29   : > { %vm733_vm9 = vmor %vm731_vm8, %vm732_vm7 }
 0xd2a   : > { %v728_v38 = vsub.f32 1.0, %v727_v37 }
 0xd2c   : > { %v729_v40 = vmul.f32 %v1295_v36, %v728_v38 }
 0xd2e   : > { %v730_v42 = vadd.f32 %v1295_v36, %v729_v40 }
 0xd30   : > { %v734_v44 = vsel %vm733_vm9, %v1295_v36, %v730_v42 }
 0xd31   : > { %v739_v46 = vsel %vm736_vm10, %v738_v43, %v734_v44 }
 0xd32   : > { %v744_v47 = vmul.f32 %v742_v45, %v739_v46  ;;  %v776_v49 = vsub.f32 1.0, %v739_v46 }
 0xd34   : > { %746 = vrot.lane.b32.xlu0 %v744_v47, %s1535_s18  ;;  %v777_v51 = vmul.f32 %v776_v49, %v695_v29 }
 0xda6   : > { %v747_v48 = vpop.permute.xlu0 %746 }
 0xda7   : > { %1118 = vmatmul.msk.f32.vlgmr.msra.gmra.mxu3 %vm257_vm1, %v747_v48 }
 0xe2a   : > { %v767_v1 = vpop.f32.mrf.mxu3 }
 0xe2b   : > { %771 = vrot.lane.b32.xlu1 %v767_v1, %s1536_s27 }
 0xe9d   : > { %v772_v2 = vpop.permute.xlu1 %771 }
 0xe9e   : > { %v774_v4 = vadd.f32 %v1115_v30, %v772_v2 }
 0xea0   : > { %1296 = vtanh.f32 %v774_v4 }
 0xea6   : > { %v1297_v5 = vpop.eup %1296 }
 0xea7   : > { %779 = vrot.lane.b32.xlu2 %v1297_v5, %s1536_s27 }
 0xf01   : > { %v780_v50 = vpop.permute.xlu2 %779 }
 0xf02   : > { %v782_v52 = vmul.f32 %v780_v50, %v739_v46 }
 0xf04   : > { %v783_v53 = vadd.f32 %v782_v52, %v777_v51 }
 0xf06   : > { %829 = vrot.lane.b32.xlu0 %v783_v53, %s1534_s25  ;;  %1120 = vmatmul.msk.f32.vlgmr.msrb.gmra.mxu0 %vm257_vm1, %v783_v53 }
 0xf78   : > { %v830_v3 = vpop.permute.xlu0 %829 }
 0xf83   : > { %v806_v55 = vpop.f32.mrf.mxu0 }
 0xf84   : > { %v809_v56 = vadd.f32 %v1119_v54, %v806_v55 }
 0xf86   : > { %v1121_v57 = vmul.f32 -1.442695, %v809_v56 }
 0xf88   : > { %1298 = vpow2.f32 %v1121_v57 }
 0xf8e   : > { %v1299_v58 = vpop.eup %1298 }
 0xf8f   : > { %v813_v59 = vadd.f32 1.0, %v1299_v58 }
 0xf91   : > { %1300 = vrcp.f32 %v813_v59  ;;  %v825_v12 = vand.u32 2147483648, %v813_v59  ;;  %v823_v61 = vand.u32 2147483647, %v813_v59  ;;  %vm819_vm12 = vweird.f32 %v813_v59 }
 0xf93   : > { %v826_v63 = vor.u32 1.1754944e-38, %v825_v12  ;;  %vm824_vm14 = vcmp.eq.f32.partialorder %v823_v61, 8.507059e+37 }
 0xf97   : > { %v1301_v9 = vpop.eup %1300 }
 0xf98   : > { %v815_v60 = vmul.f32 %v1301_v9, %v813_v59  ;;  %vm820_vm11 = vweird.f32 %v1301_v9 }
 0xf99   : > { %vm821_vm13 = vmor %vm819_vm12, %vm820_vm11 }
 0xf9a   : > { %v816_v10 = vsub.f32 1.0, %v815_v60 }
 0xf9c   : > { %v817_v13 = vmul.f32 %v1301_v9, %v816_v10 }
 0xf9e   : > { %v818_v62 = vadd.f32 %v1301_v9, %v817_v13 }
 0xfa0   : > { %v822_v0 = vsel %vm821_vm13, %v1301_v9, %v818_v62 }
 0xfa1   : > { %v827_v6 = vsel %vm824_vm14, %v826_v63, %v822_v0 }
 0xfa2   : > { %v832_v7 = vmul.f32 %v830_v3, %v827_v6  ;;  %v864_v17 = vsub.f32 1.0, %v827_v6 }
 0xfa4   : > { %834 = vrot.lane.b32.xlu1 %v832_v7, %s1535_s18  ;;  %v865_v19 = vmul.f32 %v864_v17, %v783_v53 }
0x1016   : > { %v835_v8 = vpop.permute.xlu1 %834 }
0x1017   : > { %1122 = vmatmul.msk.f32.vlgmr.msrb.gmra.mxu1 %vm257_vm1, %v835_v8 }
0x1094   : > { %v855_v11 = vpop.f32.mrf.mxu1 }
0x1095   : > { %859 = vrot.lane.b32.xlu2 %v855_v11, %s1536_s27 }
0x10ef   : > { %v860_v14 = vpop.permute.xlu2 %859 }
0x10f0   : > { %v862_v15 = vadd.f32 %v1119_v54, %v860_v14 }
0x10f2   : > { %1302 = vtanh.f32 %v862_v15 }
0x10f8   : > { %v1303_v16 = vpop.eup %1302 }
0x10f9   : > { %867 = vrot.lane.b32.xlu0 %v1303_v16, %s1536_s27 }
0x116b   : > { %v868_v18 = vpop.permute.xlu0 %867 }
0x116c   : > { %v870_v20 = vmul.f32 %v868_v18, %v827_v6 }
0x116e   : > { %v871_v21 = vadd.f32 %v870_v20, %v865_v19 }
0x1170   : > { %917 = vrot.lane.b32.xlu1 %v871_v21, %s1534_s25  ;;  %1124 = vmatmul.msk.f32.vlgmr.msrb.gmra.mxu2 %vm257_vm1, %v871_v21 }
0x11e2   : > { %v918_v37 = vpop.permute.xlu1 %917 }
0x11f3   : > { %v894_v23 = vpop.f32.mrf.mxu2 }
0x11f4   : > { %v897_v24 = vadd.f32 %v1123_v22, %v894_v23 }
0x11f6   : > { %v1125_v25 = vmul.f32 -1.442695, %v897_v24 }
0x11f8   : > { %1304 = vpow2.f32 %v1125_v25 }
0x11fe   : > { %v1305_v26 = vpop.eup %1304 }
0x11ff   : > { %v901_v27 = vadd.f32 1.0, %v1305_v26 }
0x1201   : > { %1306 = vrcp.f32 %v901_v27  ;;  %v913_v31 = vand.u32 2147483648, %v901_v27  ;;  %v911_v33 = vand.u32 2147483647, %v901_v27  ;;  %vm907_vm0 = vweird.f32 %v901_v27 }
0x1203   : > { %v914_v35 = vor.u32 1.1754944e-38, %v913_v31  ;;  %vm912_vm3 = vcmp.eq.f32.partialorder %v911_v33, 8.507059e+37 }
0x1207   : > { %v1307_v28 = vpop.eup %1306 }
0x1208   : > { %v903_v29 = vmul.f32 %v1307_v28, %v901_v27  ;;  %vm908_vm15 = vweird.f32 %v1307_v28 }
0x1209   : > { %vm909_vm2 = vmor %vm907_vm0, %vm908_vm15 }
0x120a   : > { %v904_v30 = vsub.f32 1.0, %v903_v29 }
0x120c   : > { %v905_v32 = vmul.f32 %v1307_v28, %v904_v30 }
0x120e   : > { %v906_v34 = vadd.f32 %v1307_v28, %v905_v32 }
0x1210   : > { %v910_v36 = vsel %vm909_vm2, %v1307_v28, %v906_v34 }
0x1211   : > { %v915_v38 = vsel %vm912_vm3, %v914_v35, %v910_v36 }
0x1212   : > { %v920_v39 = vmul.f32 %v918_v37, %v915_v38  ;;  %v952_v45 = vsub.f32 1.0, %v915_v38 }
0x1214   : > { %922 = vrot.lane.b32.xlu2 %v920_v39, %s1535_s18  ;;  %v953_v47 = vmul.f32 %v952_v45, %v871_v21 }
0x126e   : > { %v923_v40 = vpop.permute.xlu2 %922 }
0x126f   : > { %1126 = vmatmul.msk.f32.vlgmr.msrb.gmra.mxu3 %vm257_vm1, %v923_v40 }
0x12f2   : > { %v943_v41 = vpop.f32.mrf.mxu3 }
0x12f3   : > { %947 = vrot.lane.b32.xlu0 %v943_v41, %s1536_s27 }
0x1365   : > { %v948_v42 = vpop.permute.xlu0 %947 }
0x1366   : > { %v950_v43 = vadd.f32 %v1123_v22, %v948_v42 }
0x1368   : > { %1308 = vtanh.f32 %v950_v43 }
0x136e   : > { %v1309_v44 = vpop.eup %1308 }
0x136f   : > { %955 = vrot.lane.b32.xlu1 %v1309_v44, %s1536_s27 }
0x13e1   : > { %v956_v46 = vpop.permute.xlu1 %955 }
0x13e2   : > { %v958_v48 = vmul.f32 %v956_v46, %v915_v38 }
0x13e4   : > { %v959_v1 = vadd.f32 %v958_v48, %v953_v47 }
0x13e6   : > { %960 = vst.msk [vmem:[#allocation2] sm:$0xff] %vm257_vm1, %v959_v1 }
0x13e7   : > { %961 = vst.msk [vmem:[%s239_s19] sm:$0xff] %vm257_vm1, %v959_v1 }
0x13e8   : > { %1427 = shalt.err (!%p1424_p6)
}
0x13e9   : > { %1142 = dma.vmem_to_hbm [thread:$0]  (%p1628_p7), %s976_s15, 128, %s978_s5, %s963_s11  }
0x13ea PF: > { %s1953_s3 = sld [smem:[#allocation13_spill]]  ;;  %p1164_p8 = scmp.ge.s32.totalorder %s1526_s22, 2 }
0x13ec   : > { %p1156_p10 = pnand %p1164_p8, %p1633_p9 }
0x13ee   : > { %p1157_p12 = pneg %p1156_p10 }
0x13f0   : > { %s989_s19 = sand.u32 1, %s1953_s3  }
0x13f1   : > { %s990_s27 = scalar_lea.sflag [#allocation5], %s989_s19 }
0x13f2   : > { %1481 = dma.done.wait (%p1157_p12), %s990_s27, 128  }
0x13f3   : > { %1483 = vsyncadd (%p1157_p12), %s990_s27, 4294967168  ;;  %s20_s22 = sadd.s32 1, %s1526_s22   ;;  %s1955_s18 = sld [smem:[#allocation15_spill]] }
0x13f4   : > { %p17_p13 = scmp.ge.s32.totalorder %s20_s22, 6   ;;  %s1956_s20 = sld [smem:[#allocation18_spill]] }
0x13f5   : > { %s1957_s12 = smov %s1490_s13  ;;  %s1958_s13 = smov %s1494_s14 }
0x13f6   : > { %s1959_s14 = smov %s1684_s1  ;;  %s1960_s15 = smov %s1502_s16 }
0x13f7   : > { %s1961_s16 = smov %s1506_s17  ;;  %s1962_s17 = smov %s1687_s2 }
0x13f8   : > { %s1963_s19 = smov %s1522_s21  ;;  %s1964_s21 = smov %s1970_s7 }
0x13f9   :  { %19 = sbr.rel (!%p17_p13) target bundleno = 14 (0xe), region = 96 }
0x13fe   :  { %996 = vsyncpa [#allocation4], 1 }
0x13ff   :  { %998 = vsyncpa [#allocation4 + $0x1], 1 }
0x1400   :  { %999 = vsyncpa [#allocation7], 1 }
0x1401   :  { %1000 = vsyncpa [#allocation5], 1 }
0x1402   :  { %1002 = vsyncpa [#allocation5 + $0x1], 1 }

</bundles_post_ra>
